<compile_context>
chip_gen: v5e
topology: v5e:2x2
jax: 0.10.0
libtpu: 0.0.40
codegen_flags: <defaults>
</compile_context>

<pallas_src>
import functools

import jax
import jax.numpy as jnp
from jax.experimental import pallas as pl
from jax.experimental.pallas import tpu as pltpu


def _round_up(x, m):
    return ((x + m - 1) // m) * m


def _cdiv(a, b):
    return -(-a // b)


def _vmem_budget_and_limit():
    cap = 64 << 20  # conservative fallback (v7x per-TC VMEM)
    try:
        info = pltpu.get_tpu_info()
        cap = int(getattr(info, "vmem_capacity_bytes", cap)) or cap
    except Exception:
        pass
    budget = min(int(cap * 0.55), 60 << 20)   # ~35 MiB on v7x, ~60 MiB on v5e/v6e
    limit = min(int(cap * 0.75), 100 << 20)   # ~48 MiB on v7x, ~96 MiB on v5e/v6e
    limit = max(limit, budget + (8 << 20))
    return budget, limit


# ---------------------------------------------------------------------------
# Kernels
# ---------------------------------------------------------------------------
def _kernel_bhl_direct(w_ref, u_ref, o_ref, *, cdt):
    # w_ref: (P, H) resident ; u_ref: (1, H, TL) ; o_ref: (1, P, TL)
    o_ref[0] = jnp.dot(w_ref[...].astype(cdt), u_ref[0].astype(cdt),
                       preferred_element_type=jnp.float32).astype(o_ref.dtype)


def _kernel_bhl_acc(w_ref, u_ref, o_ref, acc_ref, *, cdt, h_rem):
    # w_ref: (P, TH) ; u_ref: (1, TH, TL) ; o_ref: (1, P, TL) ; acc_ref: (P, TL) f32
    k = pl.program_id(2)
    nk = pl.num_programs(2)

    @pl.when(k == 0)
    def _init():
        acc_ref[...] = jnp.zeros_like(acc_ref)

    x = u_ref[0]
    if h_rem:  # static: H % TH != 0 -> zero garbage rows of the ragged last H tile
        rows = jax.lax.broadcasted_iota(jnp.int32, x.shape, 0)
        valid = jnp.where(k == nk - 1, h_rem, x.shape[0])
        x = jnp.where(rows < valid, x, jnp.zeros_like(x))

    acc_ref[...] += jnp.dot(w_ref[...].astype(cdt), x.astype(cdt),
                            preferred_element_type=jnp.float32)

    @pl.when(k == nk - 1)
    def _store():
        o_ref[0] = acc_ref[...].astype(o_ref.dtype)


def _kernel_blh_direct(u_ref, wt_ref, o_ref, *, cdt):
    # u_ref: (TM, H) ; wt_ref: (H, P) resident ; o_ref: (TM, P)
    o_ref[...] = jnp.dot(u_ref[...].astype(cdt), wt_ref[...].astype(cdt),
                         preferred_element_type=jnp.float32).astype(o_ref.dtype)


def _kernel_blh_acc(u_ref, wt_ref, o_ref, acc_ref, *, cdt, h_rem):
    # u_ref: (TM, TH) ; wt_ref: (TH, P) ; o_ref: (TM, P) ; acc_ref: (TM, P) f32
    k = pl.program_id(1)
    nk = pl.num_programs(1)

    @pl.when(k == 0)
    def _init():
        acc_ref[...] = jnp.zeros_like(acc_ref)

    x = u_ref[...]
    if h_rem:  # static: mask garbage lanes of the ragged last H tile
        cols = jax.lax.broadcasted_iota(jnp.int32, x.shape, 1)
        valid = jnp.where(k == nk - 1, h_rem, x.shape[1])
        x = jnp.where(cols < valid, x, jnp.zeros_like(x))

    acc_ref[...] += jnp.dot(x.astype(cdt), wt_ref[...].astype(cdt),
                            preferred_element_type=jnp.float32)

    @pl.when(k == nk - 1)
    def _store():
        o_ref[...] = acc_ref[...].astype(o_ref.dtype)


# ---------------------------------------------------------------------------
# Forward
# ---------------------------------------------------------------------------
def linear_reservoir_ring_forward(w_in, u, *, length_last=True,
                                  compute_dtype=None, vmem_budget_bytes=None):
    """Pallas implementation of LinearReservoirRing.forward (field='real').

    w_in: (d_output, d_input)
    u:    (B, d_input, L) if length_last else (B, L, d_input)
    compute_dtype: optional MXU operand dtype (e.g. jnp.bfloat16), cast per tile
      inside the kernel; accumulation is f32, output keeps the promoted dtype.
    """
    P, H_w = w_in.shape
    out_dtype = jnp.result_type(w_in.dtype, u.dtype)
    cdt = jnp.dtype(compute_dtype) if compute_dtype is not None else jnp.dtype(out_dtype)

    budget, vmem_limit = _vmem_budget_and_limit()
    if vmem_budget_bytes is not None:
        budget = int(vmem_budget_bytes)

    u_isz = jnp.dtype(u.dtype).itemsize
    w_isz = jnp.dtype(w_in.dtype).itemsize
    o_isz = jnp.dtype(out_dtype).itemsize
    sublane = 16 if u_isz <= 2 else 8

    # ======================================================================
    # length_last=True: out[b,p,l] = sum_h W[p,h] * u[b,h,l]
    # ======================================================================
    if length_last:
        B, H, L = u.shape
        assert H == H_w, "d_input mismatch"

        L128 = _round_up(L, 128)
        if L <= 128:
            tl_opts = [L]                              # full-extent lane block
        else:
            tl_opts = sorted({min(t, L128) for t in (4096, 2048, 1024, 512, 256, 128)},
                             reverse=True)

        def need(th, tl, with_acc):
            b = (2 * P * th * w_isz          # W tile  (double-buffered, conservative)
                 + 2 * th * tl * u_isz       # u tile  (double-buffered)
                 + 2 * P * tl * o_isz)       # out tile (double-buffered)
            if with_acc:
                b += P * tl * 4              # f32 accumulator scratch
            return b

        # --- prefer the whole contraction in one step (K == 1, W resident) ---
        TH = TL = K = None
        tl_floor = min(512, tl_opts[0])
        for tl in tl_opts:
            if tl < tl_floor:
                break
            if need(H, tl, False) <= budget:
                TH, TL, K = H, tl, 1
                break
        if TH is None:                       # fall back: tile the contraction
            H128 = _round_up(H, 128)
            th_opts = sorted({min(t, H128) for t in (2048, 1024, 512, 256, 128)},
                             reverse=True)
            found = False
            for tl in tl_opts:
                for th in th_opts:
                    if need(th, tl, True) <= budget:
                        TH, TL, found = th, tl, True
                        break
                if found:
                    break
            if not found:
                TH, TL = th_opts[-1], tl_opts[-1]
            if TH >= H:
                TH, K = H, 1
            else:
                K = _cdiv(H, TH)

        n_l = _cdiv(L, TL)
        if B * n_l == 1 and L > 128:         # keep both v7x TensorCores busy
            tl2 = _round_up(_cdiv(L, 2), 128)
            if tl2 < TL:
                TL = tl2
                n_l = _cdiv(L, TL)

        cost = pl.CostEstimate(
            flops=2 * B * P * H * L, transcendentals=0,
            bytes_accessed=u.size * u_isz + w_in.size * w_isz + B * P * L * o_isz)

        if K == 1:
            out = pl.pallas_call(
                functools.partial(_kernel_bhl_direct, cdt=cdt),
                out_shape=jax.ShapeDtypeStruct((B, P, L), out_dtype),
                grid_spec=pltpu.PrefetchScalarGridSpec(
                    num_scalar_prefetch=0,
                    grid=(B, n_l),
                    in_specs=[
                        pl.BlockSpec((P, H), lambda b, l: (0, 0)),
                        pl.BlockSpec((1, H, TL), lambda b, l: (b, 0, l)),
                    ],
                    out_specs=pl.BlockSpec((1, P, TL), lambda b, l: (b, 0, l)),
                ),
                compiler_params=pltpu.CompilerParams(
                    dimension_semantics=("parallel", "parallel"),
                    vmem_limit_bytes=int(vmem_limit)),
                cost_estimate=cost,
            )(w_in, u)
            return out

        # K > 1: zero-pad W along H (tiny) so its blocks are never ragged; the
        # ragged last H tile of u is masked inside the kernel.
        H_pad = K * TH
        w_p = w_in if H_pad == H else jnp.pad(w_in, ((0, 0), (0, H_pad - H)))
        h_rem = H % TH
        out = pl.pallas_call(
            functools.partial(_kernel_bhl_acc, cdt=cdt, h_rem=h_rem),
            out_shape=jax.ShapeDtypeStruct((B, P, L), out_dtype),
            grid_spec=pltpu.PrefetchScalarGridSpec(
                num_scalar_prefetch=0,
                grid=(B, n_l, K),
                in_specs=[
                    pl.BlockSpec((P, TH), lambda b, l, k: (0, k)),
                    pl.BlockSpec((1, TH, TL), lambda b, l, k: (b, k, l)),
                ],
                out_specs=pl.BlockSpec((1, P, TL), lambda b, l, k: (b, 0, l)),
                scratch_shapes=[pltpu.VMEM((P, TL), jnp.float32)],
            ),
            compiler_params=pltpu.CompilerParams(
                dimension_semantics=("parallel", "parallel", "arbitrary"),
                vmem_limit_bytes=int(vmem_limit)),
            cost_estimate=cost,
        )(w_p, u)
        return out

    # ======================================================================
    # length_last=False: out[b,l,p] = sum_h u[b,l,h] * W[p,h]
    #   -> free reshape to (M, H) = (B*L, H), compute (M,H) @ (H,P), no transpose of u
    # ======================================================================
    B, L, H = u.shape
    assert H == H_w, "d_input mismatch"
    M = B * L
    u_flat = u.reshape(M, H)                 # row-major collapse: no copy
    w_t = jnp.swapaxes(w_in, 0, 1)           # (H, P); W is tiny

    M_up = _round_up(M, sublane)
    tm_opts = sorted({min(t, M_up) for t in (4096, 2048, 1024, 512, 256)}, reverse=True)

    def need(tm, th, with_acc):
        b = (2 * tm * th * u_isz
             + 2 * th * P * w_isz
             + 2 * tm * P * o_isz)
        if with_acc:
            b += tm * P * 4
        return b

    TM = TH = K = None
    tm_floor = min(256, tm_opts[0])
    for tm in tm_opts:                       # full-H first, largest TM that fits
        if tm < tm_floor:
            break
        if need(tm, H, False) <= budget:
            TM, TH, K = tm, H, 1
            break
    if TM is None:                           # fall back: tile the contraction
        H128 = _round_up(H, 128)
        th_opts = sorted({min(t, H128) for t in (2048, 1024, 512, 256, 128)},
                         reverse=True)
        found = False
        for tm in tm_opts:
            for th in th_opts:
                if need(tm, th, True) <= budget:
                    TM, TH, found = tm, th, True
                    break
            if found:
                break
        if not found:
            TM, TH = tm_opts[-1], th_opts[-1]
        if TH >= H:
            TH, K = H, 1
        else:
            K = _cdiv(H, TH)

    n_m = _cdiv(M, TM)
    if n_m == 1 and M > sublane:             # keep both v7x TensorCores busy
        tm2 = _round_up(_cdiv(M, 2), sublane)
        if tm2 < TM:
            TM = tm2
            n_m = _cdiv(M, TM)

    cost = pl.CostEstimate(
        flops=2 * M * P * H, transcendentals=0,
        bytes_accessed=M * H * u_isz + H * P * w_isz + M * P * o_isz)

    if K == 1:
        out = pl.pallas_call(
            functools.partial(_kernel_blh_direct, cdt=cdt),
            out_shape=jax.ShapeDtypeStruct((M, P), out_dtype),
            grid_spec=pltpu.PrefetchScalarGridSpec(
                num_scalar_prefetch=0,
                grid=(n_m,),
                in_specs=[
                    pl.BlockSpec((TM, H), lambda m: (m, 0)),
                    pl.BlockSpec((H, P), lambda m: (0, 0)),
                ],
                out_specs=pl.BlockSpec((TM, P), lambda m: (m, 0)),
            ),
            compiler_params=pltpu.CompilerParams(
                dimension_semantics=("parallel",),
                vmem_limit_bytes=int(vmem_limit)),
            cost_estimate=cost,
        )(u_flat, w_t)
    else:
        H_pad = K * TH
        w_tp = w_t if H_pad == H else jnp.pad(w_t, ((0, H_pad - H), (0, 0)))
        h_rem = H % TH
        out = pl.pallas_call(
            functools.partial(_kernel_blh_acc, cdt=cdt, h_rem=h_rem),
            out_shape=jax.ShapeDtypeStruct((M, P), out_dtype),
            grid_spec=pltpu.PrefetchScalarGridSpec(
                num_scalar_prefetch=0,
                grid=(n_m, K),
                in_specs=[
                    pl.BlockSpec((TM, TH), lambda m, k: (m, k)),
                    pl.BlockSpec((TH, P), lambda m, k: (k, 0)),
                ],
                out_specs=pl.BlockSpec((TM, P), lambda m, k: (m, 0)),
                scratch_shapes=[pltpu.VMEM((TM, P), jnp.float32)],
            ),
            compiler_params=pltpu.CompilerParams(
                dimension_semantics=("parallel", "arbitrary"),
                vmem_limit_bytes=int(vmem_limit)),
            cost_estimate=cost,
        )(u_flat, w_tp)

    return out.reshape(B, L, P)


def make_w_in_uniform_ring(key, d_output, d_input, min_radius=0.0, max_radius=1.0):
    """Deterministic stand-in for ReservoirMatrix.uniform_ring (field='real').

    Samples radius ~ U[min_radius, max_radius], angle ~ U[0, 2*pi), takes real part.
    """
    k_r, k_t = jax.random.split(key)
    radius = jax.random.uniform(k_r, (d_output, d_input),
                                minval=min_radius, maxval=max_radius)
    theta = jax.random.uniform(k_t, (d_output, d_input),
                               minval=0.0, maxval=2.0 * jnp.pi)
    # TODO(synk): field='complex' variant (complex-valued W_in) not implemented.
    return (radius * jnp.cos(theta)).astype(jnp.float32)


if __name__ == "__main__":
    key = jax.random.PRNGKey(0)
    k_w, k_u = jax.random.split(key)

    B = 2          # batch
    d_input = 32   # H
    d_output = 16  # P
    L = 8          # sequence length

    w_in = make_w_in_uniform_ring(k_w, d_output, d_input, 0.0, 1.0)
    u_ll = jax.random.normal(k_u, (B, d_input, L), dtype=jnp.float32)

    # length_last=True (no wrapper pad/cast of u, true-shape output)
    out = jax.block_until_ready(
        linear_reservoir_ring_forward(w_in, u_ll, length_last=True))
    ref = jnp.einsum("ph,bhl->bpl", w_in, u_ll)
    assert out.shape == (B, d_output, L)
    assert jnp.allclose(out, ref, atol=1e-5, rtol=1e-5)

    # length_last=False (free reshape to (B*L, H) @ W^T, true-P output)
    u_lf = jnp.transpose(u_ll, (0, 2, 1))   # build a (B, L, H) test input
    out_lf = jax.block_until_ready(
        linear_reservoir_ring_forward(w_in, u_lf, length_last=False))
    ref_lf = jnp.einsum("ph,blh->blp", w_in, u_lf)
    assert out_lf.shape == (B, L, d_output)
    assert jnp.allclose(out_lf, ref_lf, atol=1e-5, rtol=1e-5)

    # bf16 MXU path: operands cast per-tile in-kernel, f32 accumulation, f32 out
    out_bf = jax.block_until_ready(
        linear_reservoir_ring_forward(w_in, u_ll, length_last=True,
                                      compute_dtype=jnp.bfloat16))
    ref_bf = jnp.einsum("ph,bhl->bpl",
                        w_in.astype(jnp.bfloat16).astype(jnp.float32),
                        u_ll.astype(jnp.bfloat16).astype(jnp.float32))
    assert out_bf.dtype == jnp.float32
    assert jnp.allclose(out_bf, ref_bf, atol=5e-2, rtol=5e-2)

    # Force the tiled-contraction (K > 1) path with a tiny artificial budget to
    # exercise the masked accumulation kernel (H=300 -> TH=128, K=3, ragged edge).
    H2 = 300
    w2 = make_w_in_uniform_ring(k_w, d_output, H2, 0.0, 1.0)
    u2 = jax.random.normal(k_u, (B, H2, L), dtype=jnp.float32)
    out2 = jax.block_until_ready(
        linear_reservoir_ring_forward(w2, u2, length_last=True,
                                      vmem_budget_bytes=32 * 1024))
    ref2 = jnp.einsum("ph,bhl->bpl", w2, u2)
    assert out2.shape == (B, d_output, L)
    assert jnp.allclose(out2, ref2, atol=5e-2, rtol=5e-2)

    print("KERNEL_OK")
</pallas_src>

<mosaic_0001>
module attributes {stable_mosaic.version = 11 : i64} {
  func.func @_kernel_bhl_direct(%arg0: i32, %arg1: i32, %arg2: memref<16x32xf32, #tpu.memory_space<vmem>>, %arg3: memref<1x32x8xf32, #tpu.memory_space<vmem>>, %arg4: memref<1x16x8xf32, #tpu.memory_space<vmem>>) attributes {dimension_semantics = [#tpu.dimension_semantics<parallel>, #tpu.dimension_semantics<parallel>], iteration_bounds = array<i64: 2, 1>, scalar_prefetch = 0 : i64, scratch_operands = 0 : i64, tpu.core_type = #tpu.core_type<tc>, window_params = [{pipeline_mode = #tpu.pipeline_mode<synchronous>, transform_indices = @transform_0, window_bounds = array<i64: 16, 32>}, {transform_indices = @transform_1, window_bounds = array<i64: 1, 32, 8>}, {transform_indices = @transform_2, window_bounds = array<i64: 1, 16, 8>}]} {
    %c0 = arith.constant 0 : index
    %c0_0 = arith.constant 0 : index
    %0 = vector.load %arg2[%c0, %c0_0] : memref<16x32xf32, #tpu.memory_space<vmem>>, vector<16x32xf32>
    %c0_1 = arith.constant 0 : index
    %c0_2 = arith.constant 0 : index
    %c0_3 = arith.constant 0 : index
    %1 = vector.load %arg3[%c0_1, %c0_2, %c0_3] : memref<1x32x8xf32, #tpu.memory_space<vmem>>, vector<1x32x8xf32>
    %2 = vector.shape_cast %1 : vector<1x32x8xf32> to vector<32x8xf32>
    %cst = arith.constant dense<0.000000e+00> : vector<16x8xf32>
    %3 = tpu.matmul %0, %2, %cst {dimension_numbers = #tpu.dot_dimension_numbers<[1], [0], [0], [1], [0, 0, 1, 1], [], []>} : vector<16x32xf32>, vector<32x8xf32>, vector<16x8xf32> -> vector<16x8xf32>
    %c0_4 = arith.constant 0 : index
    %c0_5 = arith.constant 0 : index
    %c0_6 = arith.constant 0 : index
    %4 = vector.load %arg4[%c0_4, %c0_5, %c0_6] : memref<1x16x8xf32, #tpu.memory_space<vmem>>, vector<1x16x8xf32>
    %5 = vector.shape_cast %4 : vector<1x16x8xf32> to vector<16x8xf32>
    %6 = vector.shape_cast %3 : vector<16x8xf32> to vector<1x16x8xf32>
    tpu.vector_store %arg4[%c0_4, %c0_5, %c0_6], %6 {strides = array<i32>} : memref<1x16x8xf32, #tpu.memory_space<vmem>>, vector<1x16x8xf32>,
    return
  }
  func.func @transform_0(%arg0: i32, %arg1: i32) -> (i32, i32) {
    %c0_i32 = arith.constant 0 : i32
    %c0_i32_0 = arith.constant 0 : i32
    %c0_i32_1 = arith.constant 0 : i32
    return %c0_i32, %c0_i32_0 : i32, i32
  }
  func.func @transform_1(%arg0: i32, %arg1: i32) -> (i32, i32, i32) {
    %c0_i32 = arith.constant 0 : i32
    %c0_i32_0 = arith.constant 0 : i32
    return %arg0, %c0_i32, %arg1 : i32, i32, i32
  }
  func.func @transform_2(%arg0: i32, %arg1: i32) -> (i32, i32, i32) {
    %c0_i32 = arith.constant 0 : i32
    %c0_i32_0 = arith.constant 0 : i32
    return %arg0, %c0_i32, %arg1 : i32, i32, i32
  }
}

</mosaic_0001>

<bundles_post_ra>
// kernel: tpu_custom_call.1
= control target key start
LH: loop header
LB: loop body
LE: loop exit
PB: predicated region body
PF: predicated region fallthrough
CT: control target
= control target key end

     0   :  { %s379_s9 = smov 0   ;;  %s381_s10 = smov 0   ;;  %s418_s0 = inlined_call_operand.vmem [shape: f32[16,32], index: 0, kind: input, shape index: {}]   ;;  %s419_s1 = inlined_call_operand.vmem [shape: f32[2,32,8], index: 1, kind: input, shape index: {}]   ;;  %s420_s2 = inlined_call_operand.vmem [shape: f32[2,16,8], index: 2, kind: output, shape index: {}]  }
   0x1   :  { %s383_s11 = smov 0  }
   0x2 LB: > { %s24_s12 = sadd.s32 1, %s358_s10  ;;  %p301_p0 = scmp.ge.s32.totalorder %s362_s11, 1  ;;  %s362_s11 = sphi %s383_s11, %s12_s11   ;;  %s358_s10 = sphi %s381_s10, %s422_s10   ;;  %s354_s9 = sphi %s379_s9, %s421_s9  }
   0x3   : > { %p26_p1 = scmp.ge.s32.totalorder %s24_s12, 2  ;;  %p131_p2 = scmp.lt.s32.totalorder %s362_s11, 3 }
   0x5   : > { %s424_s12 = smov (%p26_p1, %s24_s12), 0  ;;  %p132_p3 = pnand %p301_p0, %p131_p2 }
   0x6   : > { %p159_p4 = scmp.lt.s32.totalorder (!%p132_p3), %s354_s9, 1 }
   0x7   : > { %135 = sbr.rel (%p132_p3) target bundleno = 151 (0x97), region = 28 }
   0xc   : > { %s426_s9 = smov (!%p159_p4, %s354_s9), 1  ;;  %v175_v4 = vld [vmem:[%s418_s0] sm:$0xff]  ;;  %vm181_vm0 = vcmask 261120   ;;  %v176_v5 = vld [vmem:[%s418_s0 + $0x8] sm:$0xff]  ;;  %vm211_vm1 = vcmask 64512  }
   0xd   : > { %s310_s13 = sshll.u32 %s426_s9, 5  ;;  %s311_s21 = sshll.u32 %s426_s9, 4 }
   0xe   : > { %s166_s16 = scalar_lea.vmem %s419_s1, %s310_s13  ;;  %s174_s24 = scalar_lea.vmem %s420_s2, %s311_s21 }
   0xf   : > { %v180_v0 = vld [vmem:[%s166_s16 + $0x18] sm:$0xff]  ;;  %v179_v1 = vld [vmem:[%s166_s16 + $0x10] sm:$0xff]  ;;  %v178_v2 = vld [vmem:[%s166_s16 + $0x8] sm:$0xff] }
  0x10   : > { %200 = vmatpush.msra.mxu0 %v180_v0  ;;  %312 = vmatpush.msra.mxu1 %v180_v0  ;;  %v177_v3 = vld [vmem:[%s166_s16] sm:$0xff] }
  0x12   : > { %201 = vmatpush.msra.mxu0 %v179_v1  ;;  %313 = vmatpush.msra.mxu1 %v179_v1 }
  0x14   : > { %202 = vmatpush.msra.mxu0 %v178_v2  ;;  %314 = vmatpush.msra.mxu1 %v178_v2 }
  0x16   : > { %203 = vmatpush.msra.mxu0 %v177_v3  ;;  %315 = vmatpush.msra.mxu1 %v177_v3 }
  0x17   : > { %306 = vmatmul.msk.f32.vlgmr.msra.gmra.mxu0 %vm181_vm0, %v175_v4  ;;  %307 = vmatmul.msk.f32.vlgmr.msra.gmra.mxu1 %vm181_vm0, %v176_v5 }
  0x94   : > { %v205_v6 = vpop.f32.mrf.mxu0  ;;  %v208_v7 = vpop.f32.mrf.mxu1 }
  0x95   : > { %212 = vst.msk [vmem:[%s174_s24] sm:$0xff] %vm211_vm1, %v205_v6 }
  0x96   : > { %213 = vst.msk [vmem:[%s174_s24 + $0x8] sm:$0xff] %vm211_vm1, %v208_v7 }
  0x97 PF: > { %s12_s11 = sadd.s32 1, %s362_s11   ;;  %s421_s9 = smov %s358_s10 }
  0x98   : > { %p9_p5 = scmp.ge.s32.totalorder %s12_s11, 4   ;;  %s422_s10 = smov %s424_s12 }
  0x9a   :  { %11 = sbr.rel (!%p9_p5) target bundleno = 2 (0x2), region = 58 }

</bundles_post_ra>
